<compile_context>
chip_gen: v6e
topology: v6e:2x2x1
jax: 0.10.0
libtpu: 0.0.40
codegen_flags: <defaults>
</compile_context>

<pallas_src>
import functools

import jax
import jax.numpy as jnp
from jax.experimental import pallas as pl
from jax.experimental.pallas import tpu as pltpu

EPS = 1e-15
_PAIR_TILE = 2048  # pairs per grid step; lane-dense multiple of 128 (review: 2048-4096)


def _round_up(x, m):
    return ((x + m - 1) // m) * m


def _rw_loss_kernel(hs_ref, hr_ref, wsgn_ref, acc_ref):
    # hs:   (D_pad, Pt) f32  start-node embedding per pair (D on sublanes, pairs on lanes)
    # hr:   (D_pad, Pt) f32  context-node embedding per pair
    # wsgn: (1, Pt)     f32  +1/Np for positive pairs, -1/Nn for negative pairs, 0 padding
    # acc:  (1, Pt)     f32  resident lane-dense partial sums (summed in the wrapper)

    @pl.when(pl.program_id(0) == 0)
    def _():
        acc_ref[...] = jnp.zeros_like(acc_ref)

    # Per-pair dot product: reduce over D along sublanes -> lane-dense (1, Pt).
    scores = jnp.sum(hs_ref[...] * hr_ref[...], axis=0, keepdims=True)

    # Numerically stable sigmoid (no inf/NaN intermediates for any score magnitude).
    z = jnp.exp(-jnp.abs(scores))
    sig = jnp.where(scores >= 0.0, 1.0, z) / (1.0 + z)

    # Literal PyTorch formulas: log(sigmoid+EPS) for pos, log(1-sigmoid+EPS) for neg.
    wsgn = wsgn_ref[...]
    arg = jnp.where(wsgn > 0.0, sig, 1.0 - sig) + EPS
    acc_ref[...] += jnp.abs(wsgn) * (-jnp.log(arg))


@functools.partial(jax.jit, static_argnums=(3,))
def rw_loss(pos_rw, neg_rw, embedding, dim):
    """Pallas implementation of RWLoss.forward."""
    assert embedding.shape[-1] == dim
    wp, c = pos_rw.shape
    wn, cn = neg_rw.shape

    np_pairs = wp * (c - 1)
    nn_pairs = wn * (cn - 1)
    # NOTE: like torch .mean() on an empty tensor, empty pos/neg input would yield NaN.
    p_total = np_pairs + nn_pairs

    # ---- flatten pos/neg pairs into one stream; pos/neg selector folded into weight sign ----
    idx_start = jnp.concatenate([
        jnp.repeat(pos_rw[:, 0], c - 1),
        jnp.repeat(neg_rw[:, 0], cn - 1)]).astype(jnp.int32)
    idx_rest = jnp.concatenate([
        pos_rw[:, 1:].reshape(-1),
        neg_rw[:, 1:].reshape(-1)]).astype(jnp.int32)
    wsgn = jnp.concatenate([
        jnp.full((np_pairs,), 1.0 / np_pairs, jnp.float32),
        jnp.full((nn_pairs,), -1.0 / nn_pairs, jnp.float32)])

    # ---- lane-dense tiling over the pair axis ----
    pt = min(_PAIR_TILE, _round_up(p_total, 128))
    p_pad = _round_up(p_total, pt)
    g = p_pad // pt
    pad = p_pad - p_total
    idx_start = jnp.pad(idx_start, (0, pad))     # pad index 0 is valid; weight 0 kills the term
    idx_rest = jnp.pad(idx_rest, (0, pad))
    wsgn = jnp.pad(wsgn, (0, pad)).reshape(1, p_pad)

    # ---- pre-gather embeddings (XLA gather) into lane-dense transposed (D_pad, P_pad) slabs ----
    d_pad = _round_up(dim, 8)
    emb = embedding.astype(jnp.float32)
    hs_t = jnp.take(emb, idx_start, axis=0).T    # (dim, p_pad)
    hr_t = jnp.take(emb, idx_rest, axis=0).T
    if d_pad != dim:
        hs_t = jnp.pad(hs_t, ((0, d_pad - dim), (0, 0)))
        hr_t = jnp.pad(hr_t, ((0, d_pad - dim), (0, 0)))

    cost = pl.CostEstimate(
        flops=int(p_pad * (2 * d_pad + 10)),
        transcendentals=int(2 * p_pad),
        bytes_accessed=int(2 * d_pad * p_pad * 4 + p_pad * 4 + pt * 4),
    )

    partials = pl.pallas_call(
        _rw_loss_kernel,
        out_shape=jax.ShapeDtypeStruct((1, pt), jnp.float32),
        grid_spec=pltpu.PrefetchScalarGridSpec(
            num_scalar_prefetch=0,
            grid=(g,),
            in_specs=[
                pl.BlockSpec((d_pad, pt), lambda i: (0, i)),   # start-node embeddings tile
                pl.BlockSpec((d_pad, pt), lambda i: (0, i)),   # context-node embeddings tile
                pl.BlockSpec((1, pt), lambda i: (0, i)),       # signed weight tile
            ],
            out_specs=pl.BlockSpec((1, pt), lambda i: (0, 0)),  # resident lane-dense accumulator
        ),
        compiler_params=pltpu.CompilerParams(
            dimension_semantics=("arbitrary",)),
        cost_estimate=cost,
    )(hs_t, hr_t, wsgn)

    # Final cross-lane reduce done once, outside the per-step path.
    return jnp.sum(partials)


def _stable_sigmoid(x):
    z = jnp.exp(-jnp.abs(x))
    return jnp.where(x >= 0, 1.0, z) / (1.0 + z)


def rw_loss_ref(pos_rw, neg_rw, embedding, dim):
    """Pure-JAX reference mirroring the PyTorch forward exactly."""
    h_start = embedding[pos_rw[:, 0]].reshape(pos_rw.shape[0], 1, dim)
    h_rest = embedding[pos_rw[:, 1:].reshape(-1)].reshape(pos_rw.shape[0], -1, dim)
    out = (h_start * h_rest).sum(axis=-1).reshape(-1)
    pos_loss = -jnp.log(_stable_sigmoid(out) + EPS).mean()

    h_start = embedding[neg_rw[:, 0]].reshape(neg_rw.shape[0], 1, dim)
    h_rest = embedding[neg_rw[:, 1:].reshape(-1)].reshape(neg_rw.shape[0], -1, dim)
    out = (h_start * h_rest).sum(axis=-1).reshape(-1)
    neg_loss = -jnp.log(1.0 - _stable_sigmoid(out) + EPS).mean()
    return pos_loss + neg_loss


if __name__ == "__main__":
    # Synthetic setup consistent with the module:
    #   num_nodes N = 20, context_size = 4, walks_per_node = 1,
    #   10 positive and 10 negative context windows, dim = 32.
    num_nodes = 20
    dim = 32
    context_size = 4
    n_pos_walks = 10
    n_neg_walks = 10

    key = jax.random.PRNGKey(0)
    k_emb, k_pos, k_neg = jax.random.split(key, 3)

    # Modest embedding scale (realistic for trained node2vec embeddings) keeps the
    # ill-conditioned 1-sigmoid(s)+EPS term of the negative path well away from the
    # catastrophic-cancellation regime for the correctness comparison.
    embedding = 0.25 * jax.random.normal(k_emb, (num_nodes, dim), dtype=jnp.float32)

    # TODO(synk): the torch-cluster rejection-sampled random_walk / CSR sparse adjacency
    # sampling (loader/pos_sample/neg_sample) has no Pallas equivalent; indices are synthetic.
    pos_rw = jax.random.randint(k_pos, (n_pos_walks, context_size), 0, num_nodes,
                                dtype=jnp.int32)
    neg_rw = jax.random.randint(k_neg, (n_neg_walks, context_size), 0, num_nodes,
                                dtype=jnp.int32)

    loss = jax.block_until_ready(rw_loss(pos_rw, neg_rw, embedding, dim))
    ref = jax.block_until_ready(rw_loss_ref(pos_rw, neg_rw, embedding, dim))

    assert jnp.isfinite(loss), loss
    assert jnp.allclose(loss, ref, rtol=1e-5, atol=1e-4), (loss, ref)

    print("KERNEL_OK")
</pallas_src>

<mosaic_0001>
module attributes {stable_mosaic.version = 11 : i64} {
  func.func @_rw_loss_kernel(%arg0: i32, %arg1: memref<32x128xf32, #tpu.memory_space<vmem>>, %arg2: memref<32x128xf32, #tpu.memory_space<vmem>>, %arg3: memref<1x128xf32, #tpu.memory_space<vmem>>, %arg4: memref<1x128xf32, #tpu.memory_space<vmem>>) attributes {dimension_semantics = [#tpu.dimension_semantics<arbitrary>], iteration_bounds = array<i64: 1>, scalar_prefetch = 0 : i64, scratch_operands = 0 : i64, tpu.core_type = #tpu.core_type<tc>, window_params = [{transform_indices = @transform_0, window_bounds = array<i64: 32, 128>}, {transform_indices = @transform_1, window_bounds = array<i64: 32, 128>}, {transform_indices = @transform_2, window_bounds = array<i64: 1, 128>}, {pipeline_mode = #tpu.pipeline_mode<synchronous>, transform_indices = @transform_3, window_bounds = array<i64: 1, 128>}]} {
    %c0_i32 = arith.constant 0 : i32
    %0 = arith.cmpi eq, %arg0, %c0_i32 : i32
    %1 = arith.extui %0 : i1 to i32
    %c0_i32_0 = arith.constant 0 : i32
    %2 = arith.cmpi ne, %1, %c0_i32_0 : i32
    scf.if %2 {
      %cst_18 = arith.constant 0.000000e+00 : f32
      %35 = vector.broadcast %cst_18 : f32 to vector<1x128xf32>
      %c0_19 = arith.constant 0 : index
      %c0_20 = arith.constant 0 : index
      %36 = vector.load %arg4[%c0_19, %c0_20] : memref<1x128xf32, #tpu.memory_space<vmem>>, vector<1x128xf32>
      tpu.vector_store %arg4[%c0_19, %c0_20], %35 {strides = array<i32>} : memref<1x128xf32, #tpu.memory_space<vmem>>, vector<1x128xf32>,
    } else {
    }
    %c0 = arith.constant 0 : index
    %c0_1 = arith.constant 0 : index
    %3 = vector.load %arg1[%c0, %c0_1] : memref<32x128xf32, #tpu.memory_space<vmem>>, vector<32x128xf32>
    %c0_2 = arith.constant 0 : index
    %c0_3 = arith.constant 0 : index
    %4 = vector.load %arg2[%c0_2, %c0_3] : memref<32x128xf32, #tpu.memory_space<vmem>>, vector<32x128xf32>
    %5 = arith.mulf %3, %4 : vector<32x128xf32>
    %cst = arith.constant dense<0.000000e+00> : vector<128xf32>
    %6 = vector.multi_reduction <add>, %5, %cst [0] : vector<32x128xf32> to vector<128xf32>
    %7 = vector.shape_cast %6 : vector<128xf32> to vector<1x128xf32>
    %8 = math.absf %7 : vector<1x128xf32>
    %cst_4 = arith.constant 0.000000e+00 : f32
    %9 = vector.broadcast %cst_4 : f32 to vector<1x128xf32>
    %10 = arith.subf %9, %8 : vector<1x128xf32>
    %11 = math.exp %10 : vector<1x128xf32>
    %cst_5 = arith.constant 0.000000e+00 : f32
    %12 = vector.broadcast %cst_5 : f32 to vector<1x128xf32>
    %13 = arith.cmpf oge, %7, %12 : vector<1x128xf32>
    %cst_6 = arith.constant 1.000000e+00 : f32
    %14 = vector.broadcast %cst_6 : f32 to vector<1x128xf32>
    %15 = arith.select %13, %14, %11 : vector<1x128xi1>, vector<1x128xf32>
    %cst_7 = arith.constant 1.000000e+00 : f32
    %16 = vector.broadcast %cst_7 : f32 to vector<1x128xf32>
    %17 = arith.addf %16, %11 : vector<1x128xf32>
    %18 = arith.divf %15, %17 : vector<1x128xf32>
    %c0_8 = arith.constant 0 : index
    %c0_9 = arith.constant 0 : index
    %19 = vector.load %arg3[%c0_8, %c0_9] : memref<1x128xf32, #tpu.memory_space<vmem>>, vector<1x128xf32>
    %cst_10 = arith.constant 0.000000e+00 : f32
    %20 = vector.broadcast %cst_10 : f32 to vector<1x128xf32>
    %21 = arith.cmpf ogt, %19, %20 : vector<1x128xf32>
    %cst_11 = arith.constant 1.000000e+00 : f32
    %22 = vector.broadcast %cst_11 : f32 to vector<1x128xf32>
    %23 = arith.subf %22, %18 : vector<1x128xf32>
    %24 = arith.select %21, %18, %23 : vector<1x128xi1>, vector<1x128xf32>
    %cst_12 = arith.constant 1.000000e-15 : f32
    %25 = vector.broadcast %cst_12 : f32 to vector<1x128xf32>
    %26 = arith.addf %24, %25 : vector<1x128xf32>
    %c0_13 = arith.constant 0 : index
    %c0_14 = arith.constant 0 : index
    %27 = vector.load %arg4[%c0_13, %c0_14] : memref<1x128xf32, #tpu.memory_space<vmem>>, vector<1x128xf32>
    %28 = math.absf %19 : vector<1x128xf32>
    %29 = math.log %26 : vector<1x128xf32>
    %cst_15 = arith.constant 0.000000e+00 : f32
    %30 = vector.broadcast %cst_15 : f32 to vector<1x128xf32>
    %31 = arith.subf %30, %29 : vector<1x128xf32>
    %32 = arith.mulf %28, %31 : vector<1x128xf32>
    %33 = arith.addf %27, %32 : vector<1x128xf32>
    %c0_16 = arith.constant 0 : index
    %c0_17 = arith.constant 0 : index
    %34 = vector.load %arg4[%c0_16, %c0_17] : memref<1x128xf32, #tpu.memory_space<vmem>>, vector<1x128xf32>
    tpu.vector_store %arg4[%c0_16, %c0_17], %33 {strides = array<i32>} : memref<1x128xf32, #tpu.memory_space<vmem>>, vector<1x128xf32>,
    return
  }
  func.func @transform_0(%arg0: i32) -> (i32, i32) {
    %c0_i32 = arith.constant 0 : i32
    %c0_i32_0 = arith.constant 0 : i32
    return %c0_i32, %arg0 : i32, i32
  }
  func.func @transform_1(%arg0: i32) -> (i32, i32) {
    %c0_i32 = arith.constant 0 : i32
    %c0_i32_0 = arith.constant 0 : i32
    return %c0_i32, %arg0 : i32, i32
  }
  func.func @transform_2(%arg0: i32) -> (i32, i32) {
    %c0_i32 = arith.constant 0 : i32
    %c0_i32_0 = arith.constant 0 : i32
    return %c0_i32, %arg0 : i32, i32
  }
  func.func @transform_3(%arg0: i32) -> (i32, i32) {
    %c0_i32 = arith.constant 0 : i32
    %c0_i32_0 = arith.constant 0 : i32
    %c0_i32_1 = arith.constant 0 : i32
    return %c0_i32, %c0_i32_0 : i32, i32
  }
}

</mosaic_0001>

<bundles_post_ra>
// kernel: rw_loss.1
= control target key start
LH: loop header
LB: loop body
LE: loop exit
PB: predicated region body
PF: predicated region fallthrough
CT: control target
= control target key end

     0   :  { %v73_v0 = vmov 0.0   ;;  %s130_s3 = inlined_call_operand.vmem [shape: f32[1,128], index: 3, kind: output, shape index: {}]   ;;  %s131_s0 = inlined_call_operand.vmem [shape: f32[32,128], index: 0, kind: input, shape index: {}]   ;;  %s132_s1 = inlined_call_operand.vmem [shape: f32[32,128], index: 1, kind: input, shape index: {}]   ;;  %s133_s2 = inlined_call_operand.vmem [shape: f32[1,128], index: 2, kind: input, shape index: {}]  }
   0x1   :  { %18 = vst [vmem:[%s130_s3] sm:$0x1] %v73_v0  ;;  %v19_v1 = vld [vmem:[%s131_s0] sm:$0xff]  ;;  %v20_v2 = vld [vmem:[%s131_s0 + $0x8] sm:$0xff]  ;;  %v21_v3 = vld [vmem:[%s131_s0 + $0x10] sm:$0xff] }
   0x2   :  { %v22_v4 = vld [vmem:[%s131_s0 + $0x18] sm:$0xff]  ;;  %v23_v5 = vld [vmem:[%s132_s1] sm:$0xff]  ;;  %v24_v6 = vld [vmem:[%s132_s1 + $0x8] sm:$0xff] }
   0x3   :  { %v25_v7 = vld [vmem:[%s132_s1 + $0x10] sm:$0xff]  ;;  %v26_v8 = vld [vmem:[%s132_s1 + $0x18] sm:$0xff]  ;;  %v27_v9 = vmul.f32 %v23_v5, %v19_v1  ;;  %v28_v10 = vmul.f32 %v24_v6, %v20_v2  ;;  %v49_v28 = vld [vmem:[%s133_s2] sm:$0x1] }
   0x4   :  { %v29_v11 = vmul.f32 %v25_v7, %v21_v3  ;;  %v30_v12 = vmul.f32 %v26_v8, %v22_v4  ;;  %vm50_vm1 = vcmp.gt.f32.partialorder %v49_v28, 0.0  ;;  %v55_v35 = vand.u32 2147483647, %v49_v28 }
   0x5   :  { %v31_v13 = vadd.f32 %v28_v10, %v27_v9 }
   0x7   :  { %v32_v14 = vadd.f32 %v31_v13, %v29_v11 }
   0x8   :  { %v54_v38 = vld [vmem:[%s130_s3] sm:$0x1] }
   0x9   :  { %v33_v15 = vadd.f32 %v32_v14, %v30_v12 }
   0xb   :  { %v34_v16 = vrot.slane %v33_v15, 4 }
   0xd   :  { %v35_v17 = vadd.f32 %v34_v16, %v33_v15 }
   0xf   :  { %v36_v18 = vrot.slane %v35_v17, 2 }
  0x11   :  { %v37_v19 = vadd.f32 %v36_v18, %v35_v17 }
  0x13   :  { %v38_v20 = vrot.slane %v37_v19, 1 }
  0x15   :  { %v39_v21 = vadd.f32 %v38_v20, %v37_v19 }
  0x17   :  { %v40_v22 = vand.u32 2147483647, %v39_v21  ;;  %vm44_vm0 = vcmp.ge.f32.partialorder %v39_v21, 0.0 }
  0x19   :  { %v41_v23 = vsub.f32 0.0, %v40_v22 }
  0x1b   :  { %v42_v24 = vmul.f32 1.442695, %v41_v23 }
  0x1d   :  { %67 = vpow2.f32 %v42_v24 }
  0x2a   :  { %v68_v25 = vpop.eup %67 }
  0x2b   :  { %v46_v26 = vadd.f32 1.0, %v68_v25  ;;  %v45_v27 = vsel %vm44_vm0, 1.0, %v68_v25 }
  0x2d   :  { %69 = vrcp.f32 %v46_v26 }
  0x3a   :  { %v70_v29 = vpop.eup %69 }
  0x3b   :  { %v48_v30 = vmul.f32 %v70_v29, %v45_v27 }
  0x3d   :  { %v51_v31 = vsub.f32 1.0, %v48_v30 }
  0x3f   :  { %v52_v32 = vsel %vm50_vm1, %v48_v30, %v51_v31 }
  0x40   :  { %v53_v33 = vadd.f32 1e-15, %v52_v32 }
  0x42   :  { %71 = vlog2.f32 %v53_v33 }
  0x4f   :  { %v72_v34 = vpop.eup %71 }
  0x50   :  { %v57_v36 = vmul.f32 0.6931472, %v72_v34 }
  0x52   :  { %v58_v37 = vsub.f32 0.0, %v57_v36 }
  0x54   :  { %v59_v39 = vmul.f32 %v58_v37, %v55_v35 }
  0x56   :  { %v60_v40 = vadd.f32 %v59_v39, %v54_v38 }
  0x58   :  { %61 = vst [vmem:[%s130_s3] sm:$0x1] %v60_v40 }

</bundles_post_ra>
